<compile_context>
chip_gen: v6e
topology: v6e:2x2x1
jax: 0.10.0
libtpu: 0.0.40
codegen_flags: <defaults>
</compile_context>

<pallas_src>
import math

import jax
import jax.numpy as jnp
from jax.experimental import pallas as pl
from jax.experimental.pallas import tpu as pltpu

# ----------------------------- configuration --------------------------------
SIZE_DIVISIBILITY = 8
CLIP_RES = (24, 24)        # small-scale analog of (384, 384) for ViT-B/16
BACKBONE_RES = (24, 24)    # small-scale analog of the (384, 384) backbone resize
CLIP_PATCH = 8             # clip "dense" token stride
BB_PATCH = 4               # backbone feature stride
NUM_CLASSES = 8
CLIP_DIM = 32
BB_DIM = 16

PIXEL_MEAN = (123.675, 116.28, 103.53)
PIXEL_STD = (58.395, 57.12, 57.375)
CLIP_PIXEL_MEAN = (122.7709383, 116.7460125, 104.09373615)
CLIP_PIXEL_STD = (68.5005327, 66.6321579, 70.32316305)


def _vmem_spec():
    return pl.BlockSpec(memory_space=pltpu.MemorySpace.VMEM)


# ------------------------------ Pallas kernels -------------------------------
def _resize_norm2_kernel(x_ref, wwt_ref, wh_ref, cs_ref, cb_ref, ns_ref, nb_ref,
                         clip_ref, img_ref):
    """Fused preprocess: bilinear resize (separable, batched over planes) of the
    raw image, then two per-channel affine normalizations (clip + backbone)."""
    # W-resize: (B,H,W) @ (B,W,Wo) -> (B,H,Wo)   (bf16 operands, f32 accumulate)
    t = jnp.einsum('bhw,bwt->bht', x_ref[...], wwt_ref[...],
                   preferred_element_type=jnp.float32)
    # H-resize: (B,Ho,H) @ (B,H,Wo) -> (B,Ho,Wo)
    r = jnp.einsum('boh,bht->bot', wh_ref[...], t.astype(jnp.bfloat16),
                   preferred_element_type=jnp.float32)
    # per-channel (x - mean) / std as a precomputed scale/bias FMA (f32)
    clip_ref[...] = r * cs_ref[...] + cb_ref[...]
    img_ref[...] = r * ns_ref[...] + nb_ref[...]


def _resize_kernel(x_ref, wwt_ref, wh_ref, o_ref):
    """Plain batched separable bilinear resize (f32)."""
    t = jnp.einsum('bhw,bwt->bht', x_ref[...], wwt_ref[...],
                   preferred_element_type=jnp.float32)
    o_ref[...] = jnp.einsum('boh,bht->bot', wh_ref[...], t,
                            preferred_element_type=jnp.float32)


def _affine_kernel(x_ref, s_ref, b_ref, o_ref):
    """Per-row scale/bias normalization (fallback path only)."""
    o_ref[...] = x_ref[...] * s_ref[...] + b_ref[...]


def _head_kernel(cp_ref, cw_ref, cb_ref, te_ref, up_ref,
                 bp_ref, bw_ref, bbias_ref, pw_ref, pb_ref, o_ref):
    """Fused sem_seg_head stand-in.  Intermediates never leave VMEM/vregs.

    cp: (N,T,Dp) clip patches   cw: (N,Dp,Dc)  cb: (N,T,Dc)
    te: (N,K,Dc) text embeds    up: (N,T,Tb)   bilinear-upsample matrix (kron)
    bp: (N,Tb,Dq) bb patches    bw: (N,Dq,Db)  bbias: (N,Tb,Db)
    pw: (N,K,Db) proj weight^T  pb: (N,K,Tb)
    out: (N,K,Tb) fused logits (Tb = Hb*Wb)
    """
    bf16 = jnp.bfloat16
    f32 = jnp.float32
    # clip encode_image stand-in (dense patch embed)
    feats = jnp.einsum('ntp,npd->ntd', cp_ref[...], cw_ref[...],
                       preferred_element_type=f32) + cb_ref[...]          # (N,T,Dc)
    # cost volume: correlation with text embeddings (directly in (N,K,T) layout)
    # TODO(synk): real CAT-Seg L2-normalizes clip features before the correlation.
    cost = jnp.einsum('nkd,ntd->nkt', te_ref[...], feats.astype(bf16),
                      preferred_element_type=f32)                         # (N,K,T)
    # bilinear (align_corners=False) upsample of the cost volume to guidance res
    cost_up = jnp.einsum('nkt,nts->nks', cost.astype(bf16), up_ref[...],
                         preferred_element_type=f32)                      # (N,K,Tb)
    # backbone stand-in (patch embed) + guidance class projection
    g = jnp.einsum('ntp,npd->ntd', bp_ref[...], bw_ref[...],
                   preferred_element_type=f32) + bbias_ref[...]           # (N,Tb,Db)
    guid = jnp.einsum('nkd,ntd->nkt', pw_ref[...], g.astype(bf16),
                      preferred_element_type=f32) + pb_ref[...]           # (N,K,Tb)
    o_ref[...] = cost_up + guid


# ------------------------------ helpers / wrappers ----------------------------
def _interp_matrix(out_size, in_size):
    """PyTorch F.interpolate(mode='bilinear', align_corners=False) as a matrix."""
    if out_size == in_size:
        return jnp.eye(out_size, dtype=jnp.float32)
    scale = in_size / out_size
    dst = jnp.arange(out_size, dtype=jnp.float32)
    src = (dst + 0.5) * scale - 0.5
    src = jnp.maximum(src, 0.0)
    lo = jnp.minimum(jnp.floor(src).astype(jnp.int32), in_size - 1)
    hi = jnp.minimum(lo + 1, in_size - 1)
    w = src - lo.astype(jnp.float32)
    mat = (1.0 - w)[:, None] * jax.nn.one_hot(lo, in_size, dtype=jnp.float32)
    mat = mat + w[:, None] * jax.nn.one_hot(hi, in_size, dtype=jnp.float32)
    return mat


def fused_preprocess(images, clip_scale, clip_bias, img_scale, img_bias, out_hw):
    """Resize the raw NCHW images once, then apply both per-channel affines."""
    N, C, H, W = images.shape
    Ho, Wo = out_hw
    NC = N * C
    bf = jnp.bfloat16
    x = images.reshape(NC, H, W).astype(bf)
    wwt_b = jnp.broadcast_to(_interp_matrix(Wo, W).T.astype(bf)[None], (NC, W, Wo))
    wh_b = jnp.broadcast_to(_interp_matrix(Ho, H).astype(bf)[None], (NC, Ho, H))

    def per_row(v):  # per-channel (C,) -> (N*C, Ho, 1) f32, row order n*C + c
        row = jnp.tile(v.astype(jnp.float32), N)[:, None, None]
        return jnp.broadcast_to(row, (NC, Ho, 1))

    cs, cb, ns, nb = map(per_row, (clip_scale, clip_bias, img_scale, img_bias))
    clip_r, img_r = pl.pallas_call(
        _resize_norm2_kernel,
        out_shape=(jax.ShapeDtypeStruct((NC, Ho, Wo), jnp.float32),
                   jax.ShapeDtypeStruct((NC, Ho, Wo), jnp.float32)),
        in_specs=[_vmem_spec() for _ in range(7)],
        out_specs=(_vmem_spec(), _vmem_spec()),
    )(x, wwt_b, wh_b, cs, cb, ns, nb)
    return clip_r.reshape(N, C, Ho, Wo), img_r.reshape(N, C, Ho, Wo)


def pallas_resize_planes(x, out_hw):
    """Batched bilinear (align_corners=False) resize of (..., H, W) planes, f32."""
    *lead, H, W = x.shape
    B = math.prod(lead)
    Ho, Wo = out_hw
    xb = x.reshape(B, H, W).astype(jnp.float32)
    wwt_b = jnp.broadcast_to(_interp_matrix(Wo, W).T[None], (B, W, Wo))
    wh_b = jnp.broadcast_to(_interp_matrix(Ho, H)[None], (B, Ho, H))
    out = pl.pallas_call(
        _resize_kernel,
        out_shape=jax.ShapeDtypeStruct((B, Ho, Wo), jnp.float32),
        in_specs=[_vmem_spec() for _ in range(3)],
        out_specs=_vmem_spec(),
    )(xb, wwt_b, wh_b)
    return out.reshape(*lead, Ho, Wo)


def pallas_normalize(x, mean, std):
    """(x - mean[C]) / std[C] on NCHW via a scale/bias FMA (fallback path only)."""
    N, C, H, W = x.shape
    inv = 1.0 / std.astype(jnp.float32)
    scale = jnp.tile(inv, N)[:, None]                                   # (N*C, 1)
    bias = jnp.tile(-mean.astype(jnp.float32) * inv, N)[:, None]        # (N*C, 1)
    x2 = x.reshape(N * C, H * W).astype(jnp.float32)
    out = pl.pallas_call(
        _affine_kernel,
        out_shape=jax.ShapeDtypeStruct(x2.shape, jnp.float32),
        in_specs=[_vmem_spec() for _ in range(3)],
        out_specs=_vmem_spec(),
    )(x2, scale, bias)
    return out.reshape(N, C, H, W)


def _extract_patches(x, p):
    """NCHW -> (N, T, C*p*p) non-overlapping patches (XLA glue).
    TODO(synk): at real CAT-Seg resolutions fold this gather into the head kernel
    via Element index_maps to avoid the extra HBM transpose copy."""
    N, C, H, W = x.shape
    x = x.reshape(N, C, H // p, p, W // p, p)
    x = x.transpose(0, 2, 4, 1, 3, 5)
    return x.reshape(N, (H // p) * (W // p), C * p * p)


def fused_head(clip_patches, bb_patches, params):
    """Single fused kernel: clip embed -> cost volume -> upsample -> guidance -> add."""
    N, T, Dp = clip_patches.shape
    _, Tb, Dq = bb_patches.shape
    K = NUM_CLASSES
    Hc = Wc = int(round(math.sqrt(T)))
    Hb = Wb = int(round(math.sqrt(Tb)))
    bf = jnp.bfloat16
    f32 = jnp.float32

    cp = clip_patches.astype(bf)
    bp = bb_patches.astype(bf)
    # small shared weights / biases pre-broadcast in the wrapper (a few KB each);
    # keeps the kernel body to validated batched-einsum / same-shape-add patterns.
    cw_b = jnp.broadcast_to(params["clip_w"].astype(bf)[None], (N, Dp, CLIP_DIM))
    cb_b = jnp.broadcast_to(params["clip_b"].astype(f32)[None, None, :], (N, T, CLIP_DIM))
    te_b = jnp.broadcast_to(params["text_emb"].astype(bf)[None], (N, K, CLIP_DIM))
    # bilinear upsample (Hc,Wc)->(Hb,Wb), row-major flattening, as a kron matrix
    up_t = jnp.kron(_interp_matrix(Hb, Hc), _interp_matrix(Wb, Wc)).T      # (T, Tb)
    up_b = jnp.broadcast_to(up_t.astype(bf)[None], (N, T, Tb))
    bw_b = jnp.broadcast_to(params["bb_w"].astype(bf)[None], (N, Dq, BB_DIM))
    bbias_b = jnp.broadcast_to(params["bb_b"].astype(f32)[None, None, :], (N, Tb, BB_DIM))
    pw_b = jnp.broadcast_to(params["proj_w"].T.astype(bf)[None], (N, K, BB_DIM))
    pb_b = jnp.broadcast_to(params["proj_b"].astype(f32)[None, :, None], (N, K, Tb))

    out = pl.pallas_call(
        _head_kernel,
        out_shape=jax.ShapeDtypeStruct((N, K, Tb), jnp.float32),
        in_specs=[_vmem_spec() for _ in range(10)],
        out_specs=_vmem_spec(),
    )(cp, cw_b, cb_b, te_b, up_b, bp, bw_b, bbias_b, pw_b, pb_b)
    return out.reshape(N, K, Hb, Wb)


# ------------------------------ model pieces ---------------------------------
def init_params(key):
    k1, k2, k3, k4 = jax.random.split(key, 4)
    text = jax.random.normal(k4, (NUM_CLASSES, CLIP_DIM), jnp.float32)
    text = text / jnp.linalg.norm(text, axis=-1, keepdims=True)
    return {
        "pixel_mean": jnp.array(PIXEL_MEAN, jnp.float32),
        "pixel_std": jnp.array(PIXEL_STD, jnp.float32),
        "clip_pixel_mean": jnp.array(CLIP_PIXEL_MEAN, jnp.float32),
        "clip_pixel_std": jnp.array(CLIP_PIXEL_STD, jnp.float32),
        # TODO(synk): stand-in for the pretrained CLIP ViT-B/16 dense image encoder.
        "clip_w": 0.02 * jax.random.normal(k1, (3 * CLIP_PATCH * CLIP_PATCH, CLIP_DIM), jnp.float32),
        "clip_b": jnp.zeros((CLIP_DIM,), jnp.float32),
        # TODO(synk): stand-in for the pretrained Swin/ResNet backbone.
        "bb_w": 0.02 * jax.random.normal(k2, (3 * BB_PATCH * BB_PATCH, BB_DIM), jnp.float32),
        "bb_b": jnp.zeros((BB_DIM,), jnp.float32),
        # TODO(synk): stand-in for the CAT-Seg cost-aggregation sem_seg_head guidance proj.
        "proj_w": 0.02 * jax.random.normal(k3, (BB_DIM, NUM_CLASSES), jnp.float32),
        "proj_b": jnp.zeros((NUM_CLASSES,), jnp.float32),
        "text_emb": text,  # (K, D)
    }


def catseg_demo_forward(params, batched_inputs):
    """Inference path of CATSegDemo.forward (training=False, sliding_window=False,
    use_sam=False).  Returns [{'sem_seg': (K, height, width)}]."""
    images = jnp.stack([b["image"] for b in batched_inputs]).astype(jnp.float32)  # (N,3,H,W)
    N, C, H, W = images.shape
    image_sizes = [(H, W)] * N

    # ImageList.from_tensors padding amounts (pad bottom/right with zeros)
    pad_h = -H % SIZE_DIVISIBILITY
    pad_w = -W % SIZE_DIVISIBILITY

    clip_inv = 1.0 / params["clip_pixel_std"]
    img_inv = 1.0 / params["pixel_std"]

    if pad_h == 0 and pad_w == 0 and CLIP_RES == BACKBONE_RES:
        # Fast path: zero padding -> per-channel affine normalization commutes with
        # bilinear resize, so resize the raw image ONCE and normalize afterwards.
        clip_images, images_resized = fused_preprocess(
            images,
            clip_inv, -params["clip_pixel_mean"] * clip_inv,
            img_inv, -params["pixel_mean"] * img_inv,
            CLIP_RES)
    else:
        # Faithful fallback: normalize -> zero-pad -> resize (two streams).
        clip_n = pallas_normalize(images, params["clip_pixel_mean"], params["clip_pixel_std"])
        img_n = pallas_normalize(images, params["pixel_mean"], params["pixel_std"])
        pad_cfg = ((0, 0), (0, 0), (0, pad_h), (0, pad_w))
        clip_images = pallas_resize_planes(jnp.pad(clip_n, pad_cfg), CLIP_RES)
        images_resized = pallas_resize_planes(jnp.pad(img_n, pad_cfg), BACKBONE_RES)

    # patch extraction glue (tiny arrays)
    clip_patches = _extract_patches(clip_images, CLIP_PATCH)          # (N, T, 3*p*p)
    bb_patches = _extract_patches(images_resized, BB_PATCH)           # (N, Tb, 3*p*p)

    # clip_features -> cost volume -> guidance fusion (single fused kernel)
    outputs = fused_head(clip_patches, bb_patches, params)            # (N, K, Hb, Wb)

    # inference post-processing: sem_seg_postprocess (crop to image_size, resize)
    ih, iw = image_sizes[0]
    height = batched_inputs[0].get("height", ih)
    width = batched_inputs[0].get("width", iw)
    # TODO(synk): the reference demo crops with image-pixel indices on the
    # feature-resolution map (a no-op at this scale); kept verbatim for fidelity.
    result = outputs[0][:, :ih, :iw]
    result = pallas_resize_planes(result, (height, width))            # (K, height, width)
    return [{"sem_seg": result}]


# ---------------------------------- main -------------------------------------
if __name__ == "__main__":
    key = jax.random.PRNGKey(0)
    k_img, _ = jax.random.split(key)
    params = init_params(jax.random.PRNGKey(42))

    # batch of 2 images, (C=3, H=16, W=16), pixel values in [0, 255)
    images = jax.random.uniform(k_img, (2, 3, 16, 16), jnp.float32, minval=0.0, maxval=255.0)
    batched_inputs = [
        {"image": images[i], "height": 20, "width": 20} for i in range(images.shape[0])
    ]

    results = catseg_demo_forward(params, batched_inputs)
    sem_seg = jax.block_until_ready(results[0]["sem_seg"])
    assert sem_seg.shape == (NUM_CLASSES, 20, 20), sem_seg.shape
    assert bool(jnp.all(jnp.isfinite(sem_seg)))
    print("KERNEL_OK")
</pallas_src>

<mosaic_0001>
module attributes {stable_mosaic.version = 11 : i64} {
  func.func @_resize_norm2_kernel(%arg0: memref<6x16x16xbf16, #tpu.memory_space<vmem>>, %arg1: memref<6x16x24xbf16, #tpu.memory_space<vmem>>, %arg2: memref<6x24x16xbf16, #tpu.memory_space<vmem>>, %arg3: memref<6x24x1xf32, #tpu.memory_space<vmem>>, %arg4: memref<6x24x1xf32, #tpu.memory_space<vmem>>, %arg5: memref<6x24x1xf32, #tpu.memory_space<vmem>>, %arg6: memref<6x24x1xf32, #tpu.memory_space<vmem>>, %arg7: memref<6x24x24xf32, #tpu.memory_space<vmem>>, %arg8: memref<6x24x24xf32, #tpu.memory_space<vmem>>) attributes {dimension_semantics = [], scalar_prefetch = 0 : i64, scratch_operands = 0 : i64, tpu.core_type = #tpu.core_type<tc>} {
    %c0 = arith.constant 0 : index
    %c0_0 = arith.constant 0 : index
    %c0_1 = arith.constant 0 : index
    %0 = vector.load %arg0[%c0, %c0_0, %c0_1] : memref<6x16x16xbf16, #tpu.memory_space<vmem>>, vector<6x16x16xbf16>
    %c0_2 = arith.constant 0 : index
    %c0_3 = arith.constant 0 : index
    %c0_4 = arith.constant 0 : index
    %1 = vector.load %arg1[%c0_2, %c0_3, %c0_4] : memref<6x16x24xbf16, #tpu.memory_space<vmem>>, vector<6x16x24xbf16>
    "tpu.trace_start"() <{level = 10 : i32, message = "bhw,bwt->bht"}> : () -> ()
    %cst = arith.constant dense<0.000000e+00> : vector<6x16x24xf32>
    %2 = tpu.matmul %0, %1, %cst {dimension_numbers = #tpu.dot_dimension_numbers<[2], [1], [1], [2], [0, 0, 0, 1, 1, 2], [0], [0]>} : vector<6x16x16xbf16>, vector<6x16x24xbf16>, vector<6x16x24xf32> -> vector<6x16x24xf32>
    "tpu.trace_stop"() : () -> ()
    %c0_5 = arith.constant 0 : index
    %c0_6 = arith.constant 0 : index
    %c0_7 = arith.constant 0 : index
    %3 = vector.load %arg2[%c0_5, %c0_6, %c0_7] : memref<6x24x16xbf16, #tpu.memory_space<vmem>>, vector<6x24x16xbf16>
    %4 = arith.truncf %2 : vector<6x16x24xf32> to vector<6x16x24xbf16>
    "tpu.trace_start"() <{level = 10 : i32, message = "boh,bht->bot"}> : () -> ()
    %cst_8 = arith.constant dense<0.000000e+00> : vector<6x24x24xf32>
    %5 = tpu.matmul %3, %4, %cst_8 {dimension_numbers = #tpu.dot_dimension_numbers<[2], [1], [1], [2], [0, 0, 0, 1, 1, 2], [0], [0]>} : vector<6x24x16xbf16>, vector<6x16x24xbf16>, vector<6x24x24xf32> -> vector<6x24x24xf32>
    "tpu.trace_stop"() : () -> ()
    %c0_9 = arith.constant 0 : index
    %c0_10 = arith.constant 0 : index
    %c0_11 = arith.constant 0 : index
    %6 = vector.load %arg3[%c0_9, %c0_10, %c0_11] : memref<6x24x1xf32, #tpu.memory_space<vmem>>, vector<6x24x1xf32>
    %7 = vector.broadcast %6 : vector<6x24x1xf32> to vector<6x24x24xf32>
    %8 = arith.mulf %5, %7 : vector<6x24x24xf32>
    %c0_12 = arith.constant 0 : index
    %c0_13 = arith.constant 0 : index
    %c0_14 = arith.constant 0 : index
    %9 = vector.load %arg4[%c0_12, %c0_13, %c0_14] : memref<6x24x1xf32, #tpu.memory_space<vmem>>, vector<6x24x1xf32>
    %10 = vector.broadcast %9 : vector<6x24x1xf32> to vector<6x24x24xf32>
    %11 = arith.addf %8, %10 : vector<6x24x24xf32>
    %c0_15 = arith.constant 0 : index
    %c0_16 = arith.constant 0 : index
    %c0_17 = arith.constant 0 : index
    %12 = vector.load %arg7[%c0_15, %c0_16, %c0_17] : memref<6x24x24xf32, #tpu.memory_space<vmem>>, vector<6x24x24xf32>
    tpu.vector_store %arg7[%c0_15, %c0_16, %c0_17], %11 {strides = array<i32>} : memref<6x24x24xf32, #tpu.memory_space<vmem>>, vector<6x24x24xf32>,
    %c0_18 = arith.constant 0 : index
    %c0_19 = arith.constant 0 : index
    %c0_20 = arith.constant 0 : index
    %13 = vector.load %arg5[%c0_18, %c0_19, %c0_20] : memref<6x24x1xf32, #tpu.memory_space<vmem>>, vector<6x24x1xf32>
    %14 = vector.broadcast %13 : vector<6x24x1xf32> to vector<6x24x24xf32>
    %15 = arith.mulf %5, %14 : vector<6x24x24xf32>
    %c0_21 = arith.constant 0 : index
    %c0_22 = arith.constant 0 : index
    %c0_23 = arith.constant 0 : index
    %16 = vector.load %arg6[%c0_21, %c0_22, %c0_23] : memref<6x24x1xf32, #tpu.memory_space<vmem>>, vector<6x24x1xf32>
    %17 = vector.broadcast %16 : vector<6x24x1xf32> to vector<6x24x24xf32>
    %18 = arith.addf %15, %17 : vector<6x24x24xf32>
    %c0_24 = arith.constant 0 : index
    %c0_25 = arith.constant 0 : index
    %c0_26 = arith.constant 0 : index
    %19 = vector.load %arg8[%c0_24, %c0_25, %c0_26] : memref<6x24x24xf32, #tpu.memory_space<vmem>>, vector<6x24x24xf32>
    tpu.vector_store %arg8[%c0_24, %c0_25, %c0_26], %18 {strides = array<i32>} : memref<6x24x24xf32, #tpu.memory_space<vmem>>, vector<6x24x24xf32>,
    return
  }
}

</mosaic_0001>

<bundles_post_ra>
// kernel: tpu_custom_call.1
= control target key start
LH: loop header
LB: loop body
LE: loop exit
PB: predicated region body
PF: predicated region fallthrough
CT: control target
= control target key end

     0   :  { %14 = vsyncpa [#allocation3], 0  ;;  %v1576_v1 = vmov 0.0   ;;  %vm1577_vm0 = vmmov 0   ;;  %vm66_vm1 = vcmask 130048   ;;  %v1578_v7 = vmov 0   ;;  %s2135_s0 = inlined_call_operand.vmem [shape: bf16[6,16,16], index: 0, kind: input, shape index: {}]   ;;  %s2136_s1 = inlined_call_operand.vmem [shape: bf16[6,16,24], index: 1, kind: input, shape index: {}]   ;;  %s2137_s2 = inlined_call_operand.vmem [shape: bf16[6,24,16], index: 2, kind: input, shape index: {}]   ;;  %s2138_s3 = inlined_call_operand.vmem [shape: f32[6,24,1], index: 3, kind: input, shape index: {}]   ;;  %s2139_s4 = inlined_call_operand.vmem [shape: f32[6,24,1], index: 4, kind: input, shape index: {}]   ;;  %s2140_s5 = inlined_call_operand.vmem [shape: f32[6,24,1], index: 5, kind: input, shape index: {}]   ;;  %s2141_s6 = inlined_call_operand.vmem [shape: f32[6,24,1], index: 6, kind: input, shape index: {}]   ;;  %s2142_s7 = inlined_call_operand.hbm [shape: f32[6,24,24], index: 7, kind: output, shape index: {0}]   ;;  %s2143_s8 = inlined_call_operand.hbm [shape: f32[6,24,24], index: 8, kind: output, shape index: {1}]  }
   0x1   :  { %v1508_v0 = vld [vmem:[%s2136_s1] sm:$0xff]   ;;  %1427 = vmatprep.subr.bf16.mxu0 %v1576_v1  ;;  %1433 = vmatprep.subr.bf16.mxu1 %v1576_v1  ;;  %v1509_v2 = vld [vmem:[%s2136_s1 + $0x8] sm:$0xff]   ;;  %v1512_v5 = vld [vmem:[%s2136_s1 + $0x10] sm:$0xff]  }
   0x2   :  { %1428 = vmatpush3.bf16.msra.mxu0 %v1508_v0  ;;  %1429 = vmatprep.mubr.msk.bf16.mxu0 %vm1577_vm0, %v1576_v1  ;;  %v1510_v3 = vld [vmem:[%s2135_s0] sm:$0xff]   ;;  %v1511_v4 = vld [vmem:[%s2135_s0 + $0x8] sm:$0xff]   ;;  %v1513_v6 = vld [vmem:[%s2136_s1 + $0x18] sm:$0xff]  }
   0x3   :  { %1434 = vmatpush3.bf16.msra.mxu1 %v1509_v2  ;;  %1435 = vmatprep.mubr.msk.bf16.mxu1 %vm1577_vm0, %v1576_v1  ;;  %v1514_v8 = vld [vmem:[%s2135_s0 + $0x10] sm:$0xff]   ;;  %v1515_v9 = vld [vmem:[%s2135_s0 + $0x18] sm:$0xff]   ;;  %v1516_v10 = vld [vmem:[%s2136_s1 + $0x20] sm:$0xff]  }
   0x4   :  { %1439 = vmatprep.subr.bf16.mxu0 %v1576_v1  ;;  %1445 = vmatprep.subr.bf16.mxu1 %v1576_v1  ;;  %v1517_v11 = vld [vmem:[%s2136_s1 + $0x28] sm:$0xff]   ;;  %v784_v12 = vld [vmem:[%s2138_s3 + $0x10] sm:$0xff]  ;;  %v782_v13 = vld [vmem:[%s2138_s3] sm:$0xff] }
   0x5   :  { %1430 = vmatmul.mubr.msk.bf16.vlgmr.msra.gmra.mxu0 %vm66_vm1, %v1510_v3  ;;  %1507 = vset.pattern.permute.xlu1 %v1578_v7  ;;  %v785_v14 = vld [vmem:[%s2138_s3 + $0x18] sm:$0xff]  ;;  %v1518_v15 = vld [vmem:[%s2135_s0 + $0x20] sm:$0xff]   ;;  %v783_v16 = vld [vmem:[%s2138_s3 + $0x8] sm:$0xff] }
   0x6   :  { %1436 = vmatmul.mubr.msk.bf16.vlgmr.msra.gmra.mxu1 %vm66_vm1, %v1511_v4  ;;  %1440 = vmatpush3.bf16.msra.mxu0 %v1512_v5  ;;  %v1519_v17 = vld [vmem:[%s2135_s0 + $0x28] sm:$0xff]   ;;  %v786_v19 = vld [vmem:[%s2138_s3 + $0x20] sm:$0xff]  ;;  %v789_v20 = vld [vmem:[%s2138_s3 + $0x38] sm:$0xff] }
   0x7   :  { %1446 = vmatpush3.bf16.msra.mxu1 %v1513_v6  ;;  %1441 = vmatprep.mubr.msk.bf16.mxu0 %vm1577_vm0, %v1576_v1  ;;  %v787_v18 = vld [vmem:[%s2138_s3 + $0x28] sm:$0xff]  ;;  %v788_v21 = vld [vmem:[%s2138_s3 + $0x30] sm:$0xff]  ;;  %v790_v23 = vld [vmem:[%s2138_s3 + $0x40] sm:$0xff] }
   0x8   :  { %1447 = vmatprep.mubr.msk.bf16.mxu1 %vm1577_vm0, %v1576_v1  ;;  %1451 = vmatprep.subr.bf16.mxu0 %v1576_v1  ;;  %v791_v22 = vld [vmem:[%s2138_s3 + $0x48] sm:$0xff]  ;;  %v793_v24 = vld [vmem:[%s2138_s3 + $0x58] sm:$0xff]  ;;  %v792_v25 = vld [vmem:[%s2138_s3 + $0x50] sm:$0xff] }
   0x9   :  { %1457 = vmatprep.subr.bf16.mxu1 %v1576_v1  ;;  %1506 = vset.pattern.permute.xlu0 %v1578_v7  ;;  %v795_v26 = vld [vmem:[%s2138_s3 + $0x68] sm:$0xff]  ;;  %v794_v27 = vld [vmem:[%s2138_s3 + $0x60] sm:$0xff]  ;;  %v797_v28 = vld [vmem:[%s2138_s3 + $0x78] sm:$0xff] }
   0xa   :  { %812 = vperm.xlu1 %1507, %v784_v12   ;;  %802 = vperm.xlu0 %1506, %v782_v13   ;;  %v796_v29 = vld [vmem:[%s2138_s3 + $0x70] sm:$0xff]  ;;  %v799_v30 = vld [vmem:[%s2138_s3 + $0x88] sm:$0xff] }
   0xd   :  { %1442 = vmatmul.mubr.msk.bf16.vlgmr.msra.gmra.mxu0 %vm66_vm1, %v1514_v8 }
   0xe   :  { %1448 = vmatmul.mubr.msk.bf16.vlgmr.msra.gmra.mxu1 %vm66_vm1, %v1515_v9  ;;  %1452 = vmatpush3.bf16.msra.mxu0 %v1516_v10 }
   0xf   :  { %1458 = vmatpush3.bf16.msra.mxu1 %v1517_v11  ;;  %1453 = vmatprep.mubr.msk.bf16.mxu0 %vm1577_vm0, %v1576_v1 }
  0x10   :  { %1459 = vmatprep.mubr.msk.bf16.mxu1 %vm1577_vm0, %v1576_v1  ;;  %817 = vperm.xlu1 %1507, %v785_v14  }
  0x11   :  { %807 = vperm.xlu0 %1506, %v783_v16  }
  0x14   :  { %827 = vperm.xlu1 %1507, %v787_v18  }
  0x15   :  { %1454 = vmatmul.mubr.msk.bf16.vlgmr.msra.gmra.mxu0 %vm66_vm1, %v1518_v15  ;;  %822 = vperm.xlu0 %1506, %v786_v19  }
  0x16   :  { %1460 = vmatmul.mubr.msk.bf16.vlgmr.msra.gmra.mxu1 %vm66_vm1, %v1519_v17 }
  0x18   :  { %837 = vperm.xlu1 %1507, %v789_v20  }
  0x19   :  { %832 = vperm.xlu0 %1506, %v788_v21  }
  0x1c   :  { %847 = vperm.xlu1 %1507, %v791_v22  }
  0x1d   :  { %842 = vperm.xlu0 %1506, %v790_v23  }
  0x20   :  { %857 = vperm.xlu1 %1507, %v793_v24  }
  0x21   :  { %852 = vperm.xlu0 %1506, %v792_v25  }
  0x24   :  { %867 = vperm.xlu1 %1507, %v795_v26  }
  0x25   :  { %862 = vperm.xlu0 %1506, %v794_v27  }
  0x28   :  { %877 = vperm.xlu1 %1507, %v797_v28  }
  0x29   :  { %15 = vsyncpa [#allocation5], 0  ;;  %872 = vperm.xlu0 %1506, %v796_v29   ;;  %v798_v31 = vld [vmem:[%s2138_s3 + $0x80] sm:$0xff]  ;;  %v909_v32 = vld [vmem:[%s2139_s4 + $0x8] sm:$0xff]  ;;  %vm1034_vm2 = vcmask 195584   ;;  %s1580_s19 = smov [#allocation4]  }
  0x2a   :  { %v908_v33 = vld [vmem:[%s2139_s4] sm:$0xff]  ;;  %v911_v34 = vld [vmem:[%s2139_s4 + $0x18] sm:$0xff]  ;;  %v910_v35 = vld [vmem:[%s2139_s4 + $0x10] sm:$0xff]  ;;  %s1340_s0 = sshll.u32 %s1580_s19, 4  ;;  %s1341_s0 = int_to_ptr.vmem [resolvable:$true] %s1340_s0 }
  0x2b   :  { %v913_v36 = vld [vmem:[%s2139_s4 + $0x28] sm:$0xff]  ;;  %v912_v37 = vld [vmem:[%s2139_s4 + $0x20] sm:$0xff]  ;;  %v915_v38 = vld [vmem:[%s2139_s4 + $0x38] sm:$0xff] }
  0x2c   :  { %887 = vperm.xlu1 %1507, %v799_v30   ;;  %v914_v39 = vld [vmem:[%s2139_s4 + $0x30] sm:$0xff]  ;;  %v917_v40 = vld [vmem:[%s2139_s4 + $0x48] sm:$0xff]  ;;  %v916_v41 = vld [vmem:[%s2139_s4 + $0x40] sm:$0xff] }
  0x2d   :  { %882 = vperm.xlu0 %1506, %v798_v31   ;;  %v919_v42 = vld [vmem:[%s2139_s4 + $0x58] sm:$0xff]  ;;  %v918_v43 = vld [vmem:[%s2139_s4 + $0x50] sm:$0xff]  ;;  %v921_v44 = vld [vmem:[%s2139_s4 + $0x68] sm:$0xff] }
  0x2e   :  { %v920_v45 = vld [vmem:[%s2139_s4 + $0x60] sm:$0xff]  ;;  %v923_v46 = vld [vmem:[%s2139_s4 + $0x78] sm:$0xff]  ;;  %v922_v47 = vld [vmem:[%s2139_s4 + $0x70] sm:$0xff] }
  0x2f   :  { %v925_v48 = vld [vmem:[%s2139_s4 + $0x88] sm:$0xff]  ;;  %v1520_v49 = vld [vmem:[%s2137_s2] sm:$0xff]   ;;  %v1056_v54 = vld [vmem:[%s2140_s5 + $0x18] sm:$0xff] }
  0x30   :  { %933 = vperm.xlu1 %1507, %v909_v32   ;;  %v1521_v50 = vld [vmem:[%s2137_s2 + $0xc] sm:$0xff]   ;;  %1465 = vmatprep.mubr.msk.bf16.mxu0 %vm66_vm1, %v1520_v49  ;;  %v924_v51 = vld [vmem:[%s2139_s4 + $0x80] sm:$0xff]  ;;  %v1060_v58 = vld [vmem:[%s2140_s5 + $0x38] sm:$0xff] }
  0x31   :  { %928 = vperm.xlu0 %1506, %v908_v33   ;;  %1471 = vmatprep.mubr.msk.bf16.mxu1 %vm66_vm1, %v1521_v50  ;;  %v1054_v52 = vld [vmem:[%s2140_s5 + $0x8] sm:$0xff]  ;;  %v1053_v53 = vld [vmem:[%s2140_s5] sm:$0xff]  ;;  %v1055_v55 = vld [vmem:[%s2140_s5 + $0x10] sm:$0xff] }
  0x32   :  { %v1058_v56 = vld [vmem:[%s2140_s5 + $0x28] sm:$0xff]  ;;  %v1057_v57 = vld [vmem:[%s2140_s5 + $0x20] sm:$0xff]  ;;  %v1059_v59 = vld [vmem:[%s2140_s5 + $0x30] sm:$0xff] }
  0x33   :  { %v1062_v60 = vld [vmem:[%s2140_s5 + $0x48] sm:$0xff]  ;;  %v1061_v61 = vld [vmem:[%s2140_s5 + $0x40] sm:$0xff]  ;;  %v1064_v62 = vld [vmem:[%s2140_s5 + $0x58] sm:$0xff] }
  0x34   :  { %943 = vperm.xlu1 %1507, %v911_v34   ;;  %v1063_v63 = vld [vmem:[%s2140_s5 + $0x50] sm:$0xff]  ;;  %v1066_v0 = vld [vmem:[%s2140_s5 + $0x68] sm:$0xff]  ;;  %v1065_v1 = vld [vmem:[%s2140_s5 + $0x60] sm:$0xff] }
  0x35   :  { %938 = vperm.xlu0 %1506, %v910_v35   ;;  %v1068_v2 = vld [vmem:[%s2140_s5 + $0x78] sm:$0xff]  ;;  %v1067_v3 = vld [vmem:[%s2140_s5 + $0x70] sm:$0xff]  ;;  %v1070_v4 = vld [vmem:[%s2140_s5 + $0x88] sm:$0xff] }
  0x36   :  { %v1069_v5 = vld [vmem:[%s2140_s5 + $0x80] sm:$0xff]  ;;  %v1180_v6 = vld [vmem:[%s2141_s6 + $0x8] sm:$0xff]  ;;  %v1182_v8 = vld [vmem:[%s2141_s6 + $0x18] sm:$0xff] }
  0x37   :  { %v1179_v7 = vld [vmem:[%s2141_s6] sm:$0xff]  ;;  %v1181_v9 = vld [vmem:[%s2141_s6 + $0x10] sm:$0xff]  ;;  %v1184_v10 = vld [vmem:[%s2141_s6 + $0x28] sm:$0xff] }
  0x38   :  { %953 = vperm.xlu1 %1507, %v913_v36   ;;  %v1183_v11 = vld [vmem:[%s2141_s6 + $0x20] sm:$0xff]  ;;  %v1186_v12 = vld [vmem:[%s2141_s6 + $0x38] sm:$0xff]  ;;  %v1185_v13 = vld [vmem:[%s2141_s6 + $0x30] sm:$0xff] }
  0x39   :  { %948 = vperm.xlu0 %1506, %v912_v37   ;;  %v1188_v14 = vld [vmem:[%s2141_s6 + $0x48] sm:$0xff]  ;;  %v1187_v15 = vld [vmem:[%s2141_s6 + $0x40] sm:$0xff]  ;;  %v1190_v16 = vld [vmem:[%s2141_s6 + $0x58] sm:$0xff] }
  0x3a   :  { %v1189_v17 = vld [vmem:[%s2141_s6 + $0x50] sm:$0xff]  ;;  %v1192_v18 = vld [vmem:[%s2141_s6 + $0x68] sm:$0xff]  ;;  %v1191_v19 = vld [vmem:[%s2141_s6 + $0x60] sm:$0xff] }
  0x3b   :  { %v1194_v20 = vld [vmem:[%s2141_s6 + $0x78] sm:$0xff]  ;;  %v1193_v21 = vld [vmem:[%s2141_s6 + $0x70] sm:$0xff]  ;;  %v1196_v22 = vld [vmem:[%s2141_s6 + $0x88] sm:$0xff] }
  0x3c   :  { %963 = vperm.xlu1 %1507, %v915_v38   ;;  %v1195_v23 = vld [vmem:[%s2141_s6 + $0x80] sm:$0xff]  ;;  %v1522_v34 = vld [vmem:[%s2137_s2 + $0x8] ss:$0 sps:$4 sm:$0xff]   ;;  %v1523_v36 = vld [vmem:[%s2137_s2 + $0x14] ss:$0 sps:$4 sm:$0xff]  }
  0x3d   :  { %958 = vperm.xlu0 %1506, %v914_v39   ;;  %v1524_v37 = vld [vmem:[%s2137_s2 + $0x18] sm:$0xff]   ;;  %v1525_v39 = vld [vmem:[%s2137_s2 + $0x24] sm:$0xff]   ;;  %v1526_v49 = vld [vmem:[%s2137_s2 + $0x20] ss:$0 sps:$4 sm:$0xff]  }
  0x40   :  { %973 = vperm.xlu1 %1507, %v917_v40  }
  0x41   :  { %968 = vperm.xlu0 %1506, %v916_v41  }
  0x44   :  { %983 = vperm.xlu1 %1507, %v919_v42  }
  0x45   :  { %978 = vperm.xlu0 %1506, %v918_v43  }
  0x48   :  { %993 = vperm.xlu1 %1507, %v921_v44  }
  0x49   :  { %988 = vperm.xlu0 %1506, %v920_v45  }
  0x4c   :  { %1003 = vperm.xlu1 %1507, %v923_v46  }
  0x4d   :  { %998 = vperm.xlu0 %1506, %v922_v47  }
  0x50   :  { %1013 = vperm.xlu1 %1507, %v925_v48  }
  0x51   :  { %1008 = vperm.xlu0 %1506, %v924_v51   ;;  %v1527_v51 = vld [vmem:[%s2137_s2 + $0x2c] ss:$0 sps:$4 sm:$0xff]  }
  0x54   :  { %1078 = vperm.xlu1 %1507, %v1054_v52   ;;  %v1528_v52 = vld [vmem:[%s2137_s2 + $0x30] sm:$0xff]  }
  0x55   :  { %1073 = vperm.xlu0 %1506, %v1053_v53  }
  0x58   :  { %1088 = vperm.xlu1 %1507, %v1056_v54  }
  0x59   :  { %1083 = vperm.xlu0 %1506, %v1055_v55   ;;  %v1529_v55 = vld [vmem:[%s2137_s2 + $0x3c] sm:$0xff]  }
  0x5c   :  { %1098 = vperm.xlu1 %1507, %v1058_v56  }
  0x5d   :  { %1093 = vperm.xlu0 %1506, %v1057_v57  }
  0x60   :  { %1108 = vperm.xlu1 %1507, %v1060_v58  }
  0x61   :  { %1103 = vperm.xlu0 %1506, %v1059_v59  }
  0x64   :  { %1118 = vperm.xlu1 %1507, %v1062_v60  }
  0x65   :  { %1113 = vperm.xlu0 %1506, %v1061_v61  }
  0x68   :  { %1128 = vperm.xlu1 %1507, %v1064_v62  }
  0x69   :  { %1123 = vperm.xlu0 %1506, %v1063_v63  }
  0x6c   :  { %1138 = vperm.xlu1 %1507, %v1066_v0  }
  0x6d   :  { %1133 = vperm.xlu0 %1506, %v1065_v1  }
  0x70   :  { %1148 = vperm.xlu1 %1507, %v1068_v2   ;;  %v1530_v2 = vld [vmem:[%s2137_s2 + $0x38] ss:$0 sps:$4 sm:$0xff]  }
  0x71   :  { %1143 = vperm.xlu0 %1506, %v1067_v3  }
  0x74   :  { %1158 = vperm.xlu1 %1507, %v1070_v4   ;;  %v1531_v4 = vld [vmem:[%s2137_s2 + $0x44] ss:$0 sps:$4 sm:$0xff]   ;;  %s1579_s2 = smov [#allocation2]  }
  0x75   :  { %1153 = vperm.xlu0 %1506, %v1069_v5   ;;  %s1328_s18 = sshll.u32 %s1579_s2, 4  ;;  %s1329_s18 = int_to_ptr.vmem [resolvable:$true] %s1328_s18 }
  0x76   :  { %s1532_s20 = scalar_lea.vmem %s1329_s18, 2304  ;;  %p1537_p1 = scmp.lt.s32.totalorder %s1329_s18, %s1329_s18 }
  0x77   :  { %p1533_p0 = scmp.ne.s32.totalorder %s1329_s18, %s1532_s20  ;;  %p1538_p2 = scmp.lt.s32.totalorder %s1532_s20, %s1532_s20 }
  0x78   :  { %1204 = vperm.xlu1 %1507, %v1180_v6  }
  0x79   :  { %1199 = vperm.xlu0 %1506, %v1179_v7   ;;  %p1539_p3 = por %p1538_p2, %p1537_p1 }
  0x7b   :  { %p1540_p4 = pnand %p1539_p3, %p1533_p0 }
  0x7c   :  { %1214 = vperm.xlu1 %1507, %v1182_v8  }
  0x7d   :  { %1209 = vperm.xlu0 %1506, %v1181_v9  }
  0x80   :  { %1224 = vperm.xlu1 %1507, %v1184_v10  }
  0x81   :  { %1219 = vperm.xlu0 %1506, %v1183_v11  }
  0x84   :  { %1234 = vperm.xlu1 %1507, %v1186_v12  }
  0x85   :  { %1229 = vperm.xlu0 %1506, %v1185_v13   ;;  %v1913_v42 = vpop.permute.xlu1 %812  ;;  %v1927_v53 = vpop.permute.xlu0 %802 }
  0x88   :  { %1244 = vperm.xlu1 %1507, %v1188_v14  }
  0x89   :  { %1239 = vperm.xlu0 %1506, %v1187_v15  }
  0x8b   :  { %v1932_v56 = vpop.permute.xlu1 %817 }
  0x8c   :  { %1254 = vperm.xlu1 %1507, %v1190_v16   ;;  %v1938_v0 = vpop.permute.xlu0 %807 }
  0x8d   :  { %1249 = vperm.xlu0 %1506, %v1189_v17  }
  0x8f   :  { %v1943_v3 = vpop.permute.xlu1 %827 }
  0x90   :  { %1264 = vperm.xlu1 %1507, %v1192_v18   ;;  %v1950_v5 = vpop.permute.xlu0 %822 }
  0x91   :  { %1259 = vperm.xlu0 %1506, %v1191_v19  }
  0x93   :  { %v1952_v6 = vpop.permute.xlu1 %837 }
  0x94   :  { %1274 = vperm.xlu1 %1507, %v1194_v20   ;;  %v1954_v7 = vpop.permute.xlu0 %832 }
  0x95   :  { %1269 = vperm.xlu0 %1506, %v1193_v21  }
  0x97   :  { %v1956_v8 = vpop.permute.xlu1 %847 }
  0x98   :  { %1284 = vperm.xlu1 %1507, %v1196_v22   ;;  %v1958_v9 = vpop.permute.xlu0 %842 }
  0x99   :  { %1279 = vperm.xlu0 %1506, %v1195_v23  }
  0x9b   :  { %v1960_v10 = vpop.permute.xlu1 %857 }
  0x9c   :  { %v1962_v11 = vpop.permute.xlu0 %852 }
  0x9f   :  { %v1964_v12 = vpop.permute.xlu1 %867 }
  0xa0   :  { %2144 = vst [vmem:[#allocation8_spill] sm:$0xff] %v1964_v12  ;;  %v1966_v13 = vpop.permute.xlu0 %862 }
  0xa1   :  { %2145 = vst [vmem:[#allocation9_spill] sm:$0xff] %v1966_v13 }
  0xa3   :  { %v1968_v14 = vpop.permute.xlu1 %877 }
  0xa4   :  { %2146 = vst [vmem:[#allocation10_spill] sm:$0xff] %v1968_v14  ;;  %v1970_v15 = vpop.permute.xlu0 %872 }
  0xa7   :  { %v1972_v16 = vpop.permute.xlu1 %887 }
  0xa8   :  { %2147 = vst [vmem:[#allocation11_spill] sm:$0xff] %v1972_v16  ;;  %v1974_v17 = vpop.permute.xlu0 %882 }
  0xa9   :  { %2148 = vst [vmem:[#allocation12_spill] sm:$0xff] %v1974_v17 }
  0xab   :  { %v1976_v18 = vpop.permute.xlu1 %933 }
  0xac   :  { %v1978_v19 = vpop.permute.xlu0 %928 }
  0xaf   :  { %v1980_v20 = vpop.permute.xlu1 %943 }
  0xb0   :  { %v939_v21 = vpop.permute.xlu0 %938 }
  0xb3   :  { %v954_v22 = vpop.permute.xlu1 %953 }
  0xb4   :  { %v1982_v23 = vpop.permute.xlu0 %948 }
  0xc5   :  { %v104_v24 = vpop.f32.mrf.mxu0 }
  0xc6   :  { %v159_v25 = vpop.f32.mrf.mxu1 }
  0xc7   :  { %v1431_v26 = vpop.f32.mrf.mxu0 }
  0xc8   :  { %v1437_v27 = vpop.f32.mrf.mxu1 }
  0xc9   :  { %v107_v28 = vpop.f32.mrf.mxu0 }
  0xca   :  { %v404_v29 = vpack.c.bf16 %v107_v28, %v104_v24  ;;  %v162_v30 = vpop.f32.mrf.mxu1  ;;  %v1984_v24 = vpop.permute.xlu1 %963 }
  0xcb   :  { %v405_v31 = vpack.c.bf16 %v162_v30, %v159_v25  ;;  %v1432_v32 = vpop.f32.mrf.mxu0  ;;  %v1986_v25 = vpop.permute.xlu0 %958 }
  0xcc   :  { %v1438_v33 = vpop.f32.mrf.mxu1  ;;  %1463 = vmatprep.subr.bf16.mxu0 %v404_v29 }
  0xcd   :  { %1469 = vmatprep.subr.bf16.mxu1 %v405_v31  ;;  %v214_v35 = vpop.f32.mrf.mxu0  ;;  %1464 = vmatpush3.bf16.msra.mxu0 %v404_v29 }
  0xce   :  { %v269_v38 = vpop.f32.mrf.mxu1  ;;  %1470 = vmatpush3.bf16.msra.mxu1 %v405_v31  ;;  %v1988_v26 = vpop.permute.xlu1 %973 }
  0xcf   :  { %v1443_v40 = vpop.f32.mrf.mxu0  ;;  %v1990_v27 = vpop.permute.xlu0 %968 }
  0xd0   :  { %v1449_v41 = vpop.f32.mrf.mxu1  ;;  %1466 = vmatmul.mubr.msk.bf16.vlgmr.msra.gmra.mxu0 %vm66_vm1, %v1522_v34 }
  0xd1   :  { %1472 = vmatmul.mubr.msk.bf16.vlgmr.msra.gmra.mxu1 %vm66_vm1, %v1523_v36  ;;  %v217_v43 = vpop.f32.mrf.mxu0  ;;  %1477 = vmatprep.mubr.msk.bf16.mxu0 %vm66_vm1, %v1524_v37 }
  0xd2   :  { %v406_v44 = vpack.c.bf16 %v217_v43, %v214_v35  ;;  %v272_v45 = vpop.f32.mrf.mxu1  ;;  %1483 = vmatprep.mubr.msk.bf16.mxu1 %vm66_vm1, %v1525_v39  ;;  %v1992_v28 = vpop.permute.xlu1 %983 }
  0xd3   :  { %v407_v46 = vpack.c.bf16 %v272_v45, %v269_v38  ;;  %v1444_v47 = vpop.f32.mrf.mxu0  ;;  %v1994_v29 = vpop.permute.xlu0 %978 }
  0xd4   :  { %v1450_v48 = vpop.f32.mrf.mxu1  ;;  %1475 = vmatprep.subr.bf16.mxu0 %v406_v44  ;;  %2149 = vst [vmem:[#allocation13_spill] sm:$0xff] %v1994_v29 }
  0xd5   :  { %1481 = vmatprep.subr.bf16.mxu1 %v407_v46  ;;  %v324_v50 = vpop.f32.mrf.mxu0  ;;  %1476 = vmatpush3.bf16.msra.mxu0 %v406_v44 }
  0xd6   :  { %v379_v54 = vpop.f32.mrf.mxu1  ;;  %1482 = vmatpush3.bf16.msra.mxu1 %v407_v46  ;;  %v1996_v30 = vpop.permute.xlu1 %993 }
  0xd7   :  { %v1455_v57 = vpop.f32.mrf.mxu0  ;;  %2150 = vst [vmem:[#allocation14_spill] sm:$0xff] %v1996_v30  ;;  %v1998_v31 = vpop.permute.xlu0 %988 }
  0xd8   :  { %v1461_v58 = vpop.f32.mrf.mxu1  ;;  %1478 = vmatmul.mubr.msk.bf16.vlgmr.msra.gmra.mxu0 %vm66_vm1, %v1526_v49  ;;  %2151 = vst [vmem:[#allocation15_spill] sm:$0xff] %v1998_v31 }
  0xd9   :  { %1484 = vmatmul.mubr.msk.bf16.vlgmr.msra.gmra.mxu1 %vm66_vm1, %v1527_v51  ;;  %v327_v59 = vpop.f32.mrf.mxu0  ;;  %1489 = vmatprep.mubr.msk.bf16.mxu0 %vm66_vm1, %v1528_v52 }
  0xda   :  { %v408_v60 = vpack.c.bf16 %v327_v59, %v324_v50  ;;  %v382_v61 = vpop.f32.mrf.mxu1  ;;  %1495 = vmatprep.mubr.msk.bf16.mxu1 %vm66_vm1, %v1529_v55  ;;  %v2000_v32 = vpop.permute.xlu1 %1003 }
  0xdb   :  { %v409_v62 = vpack.c.bf16 %v382_v61, %v379_v54  ;;  %v1456_v63 = vpop.f32.mrf.mxu0  ;;  %2152 = vst [vmem:[#allocation16_spill] sm:$0xff] %v2000_v32  ;;  %v2002_v33 = vpop.permute.xlu0 %998 }
  0xdc   :  { %v1462_v1 = vpop.f32.mrf.mxu1  ;;  %1487 = vmatprep.subr.bf16.mxu0 %v408_v60  ;;  %2153 = vst [vmem:[#allocation17_spill] sm:$0xff] %v2002_v33 }
  0xdd   :  { %1493 = vmatprep.subr.bf16.mxu1 %v409_v62  ;;  %1488 = vmatpush3.bf16.msra.mxu0 %v408_v60 }
  0xde   :  { %1494 = vmatpush3.bf16.msra.mxu1 %v409_v62  ;;  %v2004_v34 = vpop.permute.xlu1 %1013 }
  0xdf   :  { %2154 = vst [vmem:[#allocation18_spill] sm:$0xff] %v2004_v34  ;;  %v2006_v35 = vpop.permute.xlu0 %1008 }
  0xe0   :  { %1490 = vmatmul.mubr.msk.bf16.vlgmr.msra.gmra.mxu0 %vm66_vm1, %v1530_v2  ;;  %2155 = vst [vmem:[#allocation19_spill] sm:$0xff] %v2006_v35 }
  0xe1   :  { %1496 = vmatmul.mubr.msk.bf16.vlgmr.msra.gmra.mxu1 %vm66_vm1, %v1531_v4 }
  0xe2   :  { %v1079_v36 = vpop.permute.xlu1 %1078 }
  0xe3   :  { %v1074_v37 = vpop.permute.xlu0 %1073 }
  0xe6   :  { %v1089_v38 = vpop.permute.xlu1 %1088 }
  0xe7   :  { %v1084_v39 = vpop.permute.xlu0 %1083 }
  0xea   :  { %v1099_v40 = vpop.permute.xlu1 %1098 }
  0xeb   :  { %v1094_v41 = vpop.permute.xlu0 %1093 }
  0xee   :  { %v2008_v43 = vpop.permute.xlu1 %1108 }
  0xef   :  { %v2010_v44 = vpop.permute.xlu0 %1103 }
  0xf2   :  { %v2012_v45 = vpop.permute.xlu1 %1118 }
  0xf3   :  { %v2014_v46 = vpop.permute.xlu0 %1113 }
  0xf6   :  { %v2016_v47 = vpop.permute.xlu1 %1128 }
  0xf7   :  { %v2018_v48 = vpop.permute.xlu0 %1123 }
  0xfa   :  { %v2020_v49 = vpop.permute.xlu1 %1138 }
  0xfb   :  { %2156 = vst [vmem:[#allocation20_spill] sm:$0xff] %v2020_v49  ;;  %v2022_v50 = vpop.permute.xlu0 %1133 }
  0xfc   :  { %2157 = vst [vmem:[#allocation21_spill] sm:$0xff] %v2022_v50 }
  0xfe   :  { %v2024_v51 = vpop.permute.xlu1 %1148 }
  0xff   :  { %2158 = vst [vmem:[#allocation22_spill] sm:$0xff] %v2024_v51  ;;  %v2026_v52 = vpop.permute.xlu0 %1143 }
 0x100   :  { %2159 = vst [vmem:[#allocation23_spill] sm:$0xff] %v2026_v52 }
 0x102   :  { %v2028_v54 = vpop.permute.xlu1 %1158 }
 0x103   :  { %2160 = vst [vmem:[#allocation24_spill] sm:$0xff] %v2028_v54  ;;  %v2030_v55 = vpop.permute.xlu0 %1153 }
 0x104   :  { %2161 = vst [vmem:[#allocation25_spill] sm:$0xff] %v2030_v55 }
 0x106   :  { %v1205_v57 = vpop.permute.xlu1 %1204 }
 0x107   :  { %v1200_v58 = vpop.permute.xlu0 %1199 }
 0x10a   :  { %v1215_v59 = vpop.permute.xlu1 %1214 }
 0x10b   :  { %v1210_v60 = vpop.permute.xlu0 %1209 }
 0x10e   :  { %v1225_v61 = vpop.permute.xlu1 %1224 }
 0x10f   :  { %v1220_v62 = vpop.permute.xlu0 %1219 }
 0x112   :  { %v2032_v63 = vpop.permute.xlu1 %1234 }
 0x113   :  { %v2034_v1 = vpop.permute.xlu0 %1229 }
 0x116   :  { %v2036_v2 = vpop.permute.xlu1 %1244 }
 0x117   :  { %v1240_v4 = vpop.permute.xlu0 %1239 }
 0x11a   :  { %v1255_v30 = vpop.permute.xlu1 %1254 }
 0x190   :  { %v1467_v35 = vpop.f32.mrf.mxu0 }
 0x191   :  { %v892_v17 = vmul.f32 %v1467_v35, %v1913_v42  ;;  %v1163_v49 = vmul.f32 %v1467_v35, %v1084_v39  ;;  %v1473_v12 = vpop.f32.mrf.mxu1 }
 0x192   :  { %v895_v55 = vmul.f32 %v1473_v12, %v1943_v3  ;;  %v1166_v32 = vmul.f32 %v1473_v12, %v1099_v40  ;;  %v458_v31 = vpop.f32.mrf.mxu0 }
 0x193   :  { %v1018_v51 = vadd.f32 %v939_v21, %v892_v17  ;;  %v1289_v14 = vadd.f32 %v1210_v60, %v1163_v49  ;;  %v890_v34 = vmul.f32 %v1927_v53, %v458_v31  ;;  %v1161_v50 = vmul.f32 %v1074_v37, %v458_v31  ;;  %v520_v13 = vpop.f32.mrf.mxu1  ;;  %v2045_v17 = vpop.permute.xlu0 %1249  ;;  %v2162_v60 = vld [vmem:[#allocation23_spill] sm:$0xff] }
 0x194   :  { %v1021_v33 = vadd.f32 %v954_v22, %v895_v55  ;;  %v1292_v54 = vadd.f32 %v1225_v61, %v1166_v32  ;;  %v893_v16 = vmul.f32 %v1932_v56, %v520_v13  ;;  %v1164_v29 = vmul.f32 %v1089_v38, %v520_v13  ;;  %v1468_v52 = vpop.f32.mrf.mxu0  ;;  %v2050_v13 = vpop.permute.xlu1 %1264 }
 0x195   :  { %1037 = vst.msk [vmem:[#allocation2 + $0x10] sm:$0xff] %vm1034_vm2, %v1018_v51  ;;  %1307 = vst.msk [vmem:[#allocation4 + $0x10] sm:$0xff] %vm1034_vm2, %v1289_v14  ;;  %v1016_v42 = vadd.f32 %v1978_v19, %v890_v34  ;;  %v1287_v3 = vadd.f32 %v1200_v58, %v1161_v50  ;;  %v1474_v12 = vpop.f32.mrf.mxu1 }
 0x196   :  { %1040 = vst.msk [vmem:[#allocation2 + $0x28] sm:$0xff] %vm1034_vm2, %v1021_v33  ;;  %1310 = vst.msk [vmem:[#allocation4 + $0x28] sm:$0xff] %vm1034_vm2, %v1292_v54  ;;  %v1019_v53 = vadd.f32 %v1980_v20, %v893_v16  ;;  %v1290_v21 = vadd.f32 %v1215_v59, %v1164_v29  ;;  %v461_v56 = vpop.f32.mrf.mxu0 }
 0x197   :  { %1035 = vst.msk [vmem:[#allocation2] sm:$0xff] %vm1034_vm2, %v1016_v42  ;;  %1305 = vst.msk [vmem:[#allocation4] sm:$0xff] %vm1034_vm2, %v1287_v3  ;;  %v891_v14 = vmul.f32 %v1938_v0, %v461_v56  ;;  %v1162_v19 = vmul.f32 %v1079_v36, %v461_v56  ;;  %v523_v22 = vpop.f32.mrf.mxu1  ;;  %v2168_v56 = vld [vmem:[#allocation21_spill] sm:$0xff] }
 0x198   :  { %1038 = vst.msk [vmem:[#allocation2 + $0x18] sm:$0xff] %vm1034_vm2, %v1019_v53  ;;  %1308 = vst.msk [vmem:[#allocation4 + $0x18] sm:$0xff] %vm1034_vm2, %v1290_v21  ;;  %v894_v31 = vmul.f32 %v1950_v5, %v523_v22  ;;  %v1165_v32 = vmul.f32 %v1094_v41, %v523_v22  ;;  %v1479_v16 = vpop.f32.mrf.mxu0  ;;  %v2167_v53 = vld [vmem:[#allocation9_spill] sm:$0xff] }
 0x199   :  { %v1017_v20 = vadd.f32 %v1976_v18, %v891_v14  ;;  %v1288_v29 = vadd.f32 %v1205_v57, %v1162_v19  ;;  %v898_v33 = vmul.f32 %v1479_v16, %v1958_v9  ;;  %v1169_v34 = vmul.f32 %v1479_v16, %v2014_v46  ;;  %v1485_v35 = vpop.f32.mrf.mxu1  ;;  %v1260_v46 = vpop.permute.xlu0 %1259 }
 0x19a   :  { %v1020_v0 = vadd.f32 %v1982_v23, %v894_v31  ;;  %v1291_v36 = vadd.f32 %v1220_v62, %v1165_v32  ;;  %v901_v37 = vmul.f32 %v1485_v35, %v1960_v10  ;;  %v1172_v38 = vmul.f32 %v1485_v35, %v2016_v47  ;;  %v582_v39 = vpop.f32.mrf.mxu0  ;;  %v2163_v62 = vld [vmem:[#allocation13_spill] sm:$0xff]  ;;  %v2170_v32 = vld [vmem:[#allocation10_spill] sm:$0xff] }
 0x19b   :  { %1036 = vst.msk [vmem:[#allocation2 + $0x8] sm:$0xff] %vm1034_vm2, %v1017_v20  ;;  %1306 = vst.msk [vmem:[#allocation4 + $0x8] sm:$0xff] %vm1034_vm2, %v1288_v29  ;;  %v1024_v5 = vadd.f32 %v1990_v27, %v898_v33  ;;  %v1295_v18 = vadd.f32 %v1240_v4, %v1169_v34  ;;  %v896_v9 = vmul.f32 %v1954_v7, %v582_v39  ;;  %v644_v41 = vpop.f32.mrf.mxu1  ;;  %v1275_v27 = vpop.permute.xlu1 %1274  ;;  %v2164_v4 = vld [vmem:[#allocation11_spill] sm:$0xff]  ;;  %v2171_v20 = vld [vmem:[#allocation22_spill] sm:$0xff] }
 0x19c   :  { %v1167_v40 = vmul.f32 %v2010_v44, %v582_v39  ;;  %1039 = vst.msk [vmem:[#allocation2 + $0x20] sm:$0xff] %vm1034_vm2, %v1020_v0  ;;  %1309 = vst.msk [vmem:[#allocation4 + $0x20] sm:$0xff] %vm1034_vm2, %v1291_v36  ;;  %v1027_v10 = vadd.f32 %v1992_v28, %v901_v37  ;;  %v1298_v23 = vadd.f32 %v1255_v30, %v1172_v38  ;;  %v1480_v50 = vpop.f32.mrf.mxu0  ;;  %v2172_v34 = vld [vmem:[#allocation15_spill] sm:$0xff]  ;;  %v2173_v37 = vld [vmem:[#allocation16_spill] sm:$0xff] }
 0x19d   :  { %v899_v47 = vmul.f32 %v1956_v8, %v644_v41  ;;  %v1170_v49 = vmul.f32 %v2012_v45, %v644_v41  ;;  %1043 = vst.msk [vmem:[#allocation2 + $0x40] sm:$0xff] %vm1034_vm2, %v1024_v5  ;;  %1313 = vst.msk [vmem:[#allocation4 + $0x40] sm:$0xff] %vm1034_vm2, %v1295_v18  ;;  %v1022_v7 = vadd.f32 %v1986_v25, %v896_v9  ;;  %v1486_v51 = vpop.f32.mrf.mxu1  ;;  %v2174_v18 = vld [vmem:[#allocation8_spill] sm:$0xff] }
 0x19e   :  { %v1293_v44 = vadd.f32 %v2034_v1, %v1167_v40  ;;  %1046 = vst.msk [vmem:[#allocation2 + $0x58] sm:$0xff] %vm1034_vm2, %v1027_v10  ;;  %1316 = vst.msk [vmem:[#allocation4 + $0x58] sm:$0xff] %vm1034_vm2, %v1298_v23  ;;  %v585_v30 = vpop.f32.mrf.mxu0  ;;  %v2175_v40 = vld [vmem:[#allocation20_spill] sm:$0xff]  ;;  %v2179_v51 = vld [vmem:[#allocation19_spill] sm:$0xff] }
 0x19f   :  { %v1025_v28 = vadd.f32 %v1988_v26, %v899_v47  ;;  %v1296_v8 = vadd.f32 %v2036_v2, %v1170_v49  ;;  %1041 = vst.msk [vmem:[#allocation2 + $0x30] sm:$0xff] %vm1034_vm2, %v1022_v7  ;;  %v897_v45 = vmul.f32 %v1952_v6, %v585_v30  ;;  %v1168_v25 = vmul.f32 %v2008_v43, %v585_v30  ;;  %v647_v52 = vpop.f32.mrf.mxu1  ;;  %v1270_v43 = vpop.permute.xlu0 %1269  ;;  %v2176_v10 = vld [vmem:[#allocation12_spill] sm:$0xff]  ;;  %v2177_v47 = vld [vmem:[#allocation25_spill] sm:$0xff] }
 0x1a0   :  { %1311 = vst.msk [vmem:[#allocation4 + $0x30] sm:$0xff] %vm1034_vm2, %v1293_v44  ;;  %v900_v54 = vmul.f32 %v1962_v11, %v647_v52  ;;  %v1171_v26 = vmul.f32 %v2018_v48, %v647_v52  ;;  %v1491_v55 = vpop.f32.mrf.mxu0  ;;  %v2165_v11 = vld [vmem:[#allocation24_spill] sm:$0xff]  ;;  %v1285_v12 = vpop.permute.xlu1 %1284 }
 0x1a1   :  { %1044 = vst.msk [vmem:[#allocation2 + $0x48] sm:$0xff] %vm1034_vm2, %v1025_v28  ;;  %1314 = vst.msk [vmem:[#allocation4 + $0x48] sm:$0xff] %vm1034_vm2, %v1296_v8  ;;  %v1023_v57 = vadd.f32 %v1984_v24, %v897_v45  ;;  %v1294_v58 = vadd.f32 %v2032_v63, %v1168_v25  ;;  %v904_v59 = vmul.f32 %v1491_v55, %v1970_v15  ;;  %v1497_v61 = vpop.f32.mrf.mxu1  ;;  %v2166_v24 = vld [vmem:[#allocation17_spill] sm:$0xff] }
 0x1a2   :  { %v1175_v6 = vmul.f32 %v1491_v55, %v2162_v60  ;;  %v1026_v1 = vadd.f32 %v2163_v62, %v900_v54  ;;  %v1297_v2 = vadd.f32 %v2045_v17, %v1171_v26  ;;  %v907_v42 = vmul.f32 %v1497_v61, %v2164_v4  ;;  %v706_v48 = vpop.f32.mrf.mxu0  ;;  %v2169_v17 = vld [vmem:[#allocation18_spill] sm:$0xff] }
 0x1a3   :  { %v1178_v3 = vmul.f32 %v1497_v61, %v2165_v11  ;;  %1042 = vst.msk [vmem:[#allocation2 + $0x38] sm:$0xff] %vm1034_vm2, %v1023_v57  ;;  %1312 = vst.msk [vmem:[#allocation4 + $0x38] sm:$0xff] %vm1034_vm2, %v1294_v58  ;;  %v1030_v15 = vadd.f32 %v2166_v24, %v904_v59  ;;  %v902_v21 = vmul.f32 %v2167_v53, %v706_v48  ;;  %v768_v19 = vpop.f32.mrf.mxu1  ;;  %v1280_v50 = vpop.permute.xlu0 %1279 }
 0x1a4   :  { %v1301_v63 = vadd.f32 %v1270_v43, %v1175_v6  ;;  %v1173_v14 = vmul.f32 %v2168_v56, %v706_v48  ;;  %1045 = vst.msk [vmem:[#allocation2 + $0x50] sm:$0xff] %vm1034_vm2, %v1026_v1  ;;  %1315 = vst.msk [vmem:[#allocation4 + $0x50] sm:$0xff] %vm1034_vm2, %v1297_v2  ;;  %v1033_v22 = vadd.f32 %v2169_v17, %v907_v42  ;;  %v1492_v33 = vpop.f32.mrf.mxu0 }
 0x1a5   :  { %v1304_v31 = vadd.f32 %v1285_v12, %v1178_v3  ;;  %v905_v16 = vmul.f32 %v2170_v32, %v768_v19  ;;  %v1176_v29 = vmul.f32 %v2171_v20, %v768_v19  ;;  %1049 = vst.msk [vmem:[#allocation2 + $0x70] sm:$0xff] %vm1034_vm2, %v1030_v15  ;;  %v1028_v35 = vadd.f32 %v2172_v34, %v902_v21  ;;  %v1498_v36 = vpop.f32.mrf.mxu1 }
 0x1a6   :  { %1319 = vst.msk [vmem:[#allocation4 + $0x70] sm:$0xff] %vm1034_vm2, %v1301_v63  ;;  %v1299_v0 = vadd.f32 %v1260_v46, %v1173_v14  ;;  %1052 = vst.msk [vmem:[#allocation2 + $0x88] sm:$0xff] %vm1034_vm2, %v1033_v22  ;;  %v709_v5 = vpop.f32.mrf.mxu0 }
 0x1a7   :  { %1322 = vst.msk [vmem:[#allocation4 + $0x88] sm:$0xff] %vm1034_vm2, %v1304_v31  ;;  %v1031_v38 = vadd.f32 %v2173_v37, %v905_v16  ;;  %v1302_v39 = vadd.f32 %v1275_v27, %v1176_v29  ;;  %1047 = vst.msk [vmem:[#allocation2 + $0x60] sm:$0xff] %vm1034_vm2, %v1028_v35  ;;  %v903_v9 = vmul.f32 %v2174_v18, %v709_v5  ;;  %v771_v46 = vpop.f32.mrf.mxu1  ;;  %v2178_v27 = vld [vmem:[#allocation14_spill] sm:$0xff] }
 0x1a8   :  { %1317 = vst.msk [vmem:[#allocation4 + $0x60] sm:$0xff] %vm1034_vm2, %v1299_v0  ;;  %v1174_v41 = vmul.f32 %v2175_v40, %v709_v5  ;;  %v906_v23 = vmul.f32 %v2176_v10, %v771_v46  ;;  %v1177_v49 = vmul.f32 %v2177_v47, %v771_v46 }
 0x1a9   :  { %1050 = vst.msk [vmem:[#allocation2 + $0x78] sm:$0xff] %vm1034_vm2, %v1031_v38  ;;  %1320 = vst.msk [vmem:[#allocation4 + $0x78] sm:$0xff] %vm1034_vm2, %v1302_v39  ;;  %v1029_v7 = vadd.f32 %v2178_v27, %v903_v9 }
 0x1aa   :  { %v1300_v44 = vadd.f32 %v2050_v13, %v1174_v41  ;;  %v1032_v28 = vadd.f32 %v2179_v51, %v906_v23  ;;  %v1303_v8 = vadd.f32 %v1280_v50, %v1177_v49 }
 0x1ab   :  { %1048 = vst.msk [vmem:[#allocation2 + $0x68] sm:$0xff] %vm1034_vm2, %v1029_v7 }
 0x1ac   :  { %1318 = vst.msk [vmem:[#allocation4 + $0x68] sm:$0xff] %vm1034_vm2, %v1300_v44  ;;  %1051 = vst.msk [vmem:[#allocation2 + $0x80] sm:$0xff] %vm1034_vm2, %v1032_v28 }
 0x1ad   :  { %1321 = vst.msk [vmem:[#allocation4 + $0x80] sm:$0xff] %vm1034_vm2, %v1303_v8 }
 0x1ae   :  { %1543 = shalt.err (!%p1540_p4)
}
 0x1af   :  { %s1581_s21 = smov 128   ;;  %s1582_s22 = smov 8  }
 0x1b0   :  { %1334 = dma.vmem_to_hbm [thread:$0]  %s1329_s18, 2304, %s2142_s7, [#allocation3], %s1581_s21, %s1581_s21, %s1582_s22  }
 0x1b1   :  { %s1552_s24 = scalar_lea.vmem %s1341_s0, 2304  ;;  %p1557_p6 = scmp.lt.s32.totalorder %s1341_s0, %s1341_s0 }
 0x1b2   :  { %p1553_p5 = scmp.ne.s32.totalorder %s1341_s0, %s1552_s24  ;;  %p1558_p7 = scmp.lt.s32.totalorder %s1552_s24, %s1552_s24 }
 0x1b4   :  { %p1559_p8 = por %p1558_p7, %p1557_p6 }
 0x1b6   :  { %p1560_p9 = pnand %p1559_p8, %p1553_p5 }
 0x1b8   :  { %1563 = shalt.err (!%p1560_p9)
}
 0x1b9   :  { %1346 = dma.vmem_to_hbm [thread:$0]  %s1341_s0, 2304, %s2143_s8, [#allocation5], %s1581_s21, %s1581_s21, %s1582_s22  }
 0x1ba   :  { %1572 = dma.done.wait [#allocation3], 2304  }
 0x1bb   :  { %1573 = vsyncadd [#allocation3], 4294964992 }
 0x1bc   :  { %1574 = dma.done.wait [#allocation5], 2304  }
 0x1bd   :  { %1575 = vsyncadd [#allocation5], 4294964992 }
 0x1be   :  { %1353 = vsyncpa [#allocation3], 1 }
 0x1bf   :  { %1354 = vsyncpa [#allocation5], 1 }

</bundles_post_ra>
